<compile_context>
chip_gen: v6e
topology: v6e:2x2x1
jax: 0.10.0
libtpu: 0.0.40
codegen_flags: <defaults>
</compile_context>

<pallas_src>
import jax
import jax.numpy as jnp
from jax.experimental import pallas as pl
from jax.experimental.pallas import tpu as pltpu

_EPS_IN = 1e-3   # InstanceNorm2d eps
_EPS_BN = 1e-5   # BatchNorm2d eps


def _pick_batch_block(n, c, cout, hw, budget_bytes=2 << 20):
    """Largest divisor of n whose (Nb, max(C,Cout), HW) f32 block fits budget."""
    per_n = max(c, cout) * hw * 4
    nb = max(1, min(n, budget_bytes // max(per_n, 1)))
    while n % nb != 0:
        nb -= 1
    return nb


def channel_forward(x_nchw, conv_w, conv_b, weight_1):
    """x_nchw: (N, C, H, W) f32 (PyTorch layout).  Returns (N, Cout, H, W)."""
    n, c, h, w = x_nchw.shape
    cout = conv_w.shape[0]
    hw = h * w

    # NCHW -> (N, C, HW): contiguous reshape, no transpose.
    x = x_nchw.reshape(n, c, hw)

    # Fold the scalar output scale (weight_1) into conv weight and bias.
    scale = weight_1.reshape(())
    w_mat = (conv_w.reshape(cout, c) * scale).astype(jnp.float32)   # (Cout, C)
    b_mat = (conv_b * scale).reshape(cout, 1).astype(jnp.float32)   # (Cout, 1)

    nb = _pick_batch_block(n, c, cout, hw)
    num_tiles = n // nb
    inv_n = 1.0 / float(n)

    # ------------------------------------------------------------------ #
    # Pass 1: per-(n,c) instance-norm stats + per-channel BN scale.
    # ------------------------------------------------------------------ #
    def stats_kernel(x_ref, mu_ref, istd_ref, bn_ref):
        i = pl.program_id(0)
        xb = x_ref[...]                                        # (Nb, C, HW)

        # Two-pass centered variance (safe against cancellation).
        mu = jnp.mean(xb, axis=-1, keepdims=True)              # (Nb, C, 1)
        d = xb - mu
        var = jnp.mean(d * d, axis=-1, keepdims=True)          # biased var

        mu_ref[...] = mu
        istd_ref[...] = jax.lax.rsqrt(var + _EPS_IN)

        # BatchNorm stats over the full (N, HW) extent, analytically:
        #   sum(x_in) = 0,  sum(x_in^2) = HW * var / (var + eps_in)
        # => var_b[c] = mean_n( var / (var + eps_in) ).
        @pl.when(i == 0)
        def _init():
            bn_ref[...] = jnp.zeros_like(bn_ref)

        bn_ref[...] += jnp.sum(var / (var + _EPS_IN), axis=0, keepdims=True)

        @pl.when(i == pl.num_programs(0) - 1)
        def _finalize():
            bn_ref[...] = jax.lax.rsqrt(bn_ref[...] * inv_n + _EPS_BN)

    mu_i, istd_i, bn_scale = pl.pallas_call(
        stats_kernel,
        out_shape=(
            jax.ShapeDtypeStruct((n, c, 1), jnp.float32),   # instance mean
            jax.ShapeDtypeStruct((n, c, 1), jnp.float32),   # instance inv_std
            jax.ShapeDtypeStruct((1, c, 1), jnp.float32),   # BN inv_std (per C)
        ),
        grid_spec=pltpu.PrefetchScalarGridSpec(
            num_scalar_prefetch=0,
            grid=(num_tiles,),
            in_specs=[pl.BlockSpec((nb, c, hw), lambda i: (i, 0, 0))],
            out_specs=[
                pl.BlockSpec((nb, c, 1), lambda i: (i, 0, 0)),
                pl.BlockSpec((nb, c, 1), lambda i: (i, 0, 0)),
                pl.BlockSpec((1, c, 1), lambda i: (0, 0, 0)),
            ],
        ),
        # Accumulation in the bn_scale output requires sequential execution.
        compiler_params=pltpu.CompilerParams(
            dimension_semantics=("arbitrary",)),
    )(x)

    # ------------------------------------------------------------------ #
    # Pass 2: normalize + ReLU + 1x1 conv (MXU).  Fully parallel over batch
    # tiles -> shardable across TensorCores (v7x megacore).
    # ------------------------------------------------------------------ #
    def apply_kernel(x_ref, mu_ref, istd_ref, bn_ref, w_ref, b_ref, o_ref):
        # Combined per-(n,c) scale: instance inv_std * BN inv_std (>0, so ReLU
        # commutes and BN mean is exactly 0 by construction).
        s = istd_ref[...] * bn_ref[...]                         # (Nb, C, 1)
        x_act = jnp.maximum((x_ref[...] - mu_ref[...]) * s, 0.0)

        wk = w_ref[...]                                         # (Cout, C)
        bias = b_ref[...]                                       # (Cout, 1)

        for bidx in range(nb):
            xa = x_act[bidx]                                    # (C, HW)
            if c >= 8:
                # 1x1 conv as a single MXU matmul, f32 accumulation.
                y = jnp.dot(wk, xa, preferred_element_type=jnp.float32)
            else:
                # VPU fallback for very shallow channel counts.
                y = xa[0:1, :] * wk[:, 0:1]
                for cc in range(1, c):
                    y = y + xa[cc:cc + 1, :] * wk[:, cc:cc + 1]
            o_ref[bidx] = (y + bias).astype(o_ref.dtype)        # lane-dense store

    out = pl.pallas_call(
        apply_kernel,
        out_shape=jax.ShapeDtypeStruct((n, cout, hw), jnp.float32),
        grid_spec=pltpu.PrefetchScalarGridSpec(
            num_scalar_prefetch=0,
            grid=(num_tiles,),
            in_specs=[
                pl.BlockSpec((nb, c, hw), lambda i: (i, 0, 0)),
                pl.BlockSpec((nb, c, 1), lambda i: (i, 0, 0)),
                pl.BlockSpec((nb, c, 1), lambda i: (i, 0, 0)),
                pl.BlockSpec((1, c, 1), lambda i: (0, 0, 0)),
                pl.BlockSpec((cout, c), lambda i: (0, 0)),
                pl.BlockSpec((cout, 1), lambda i: (0, 0)),
            ],
            out_specs=pl.BlockSpec((nb, cout, hw), lambda i: (i, 0, 0)),
        ),
        compiler_params=pltpu.CompilerParams(
            dimension_semantics=("parallel",)),
    )(x, mu_i, istd_i, bn_scale, w_mat, b_mat)

    # (N, Cout, HW) -> (N, Cout, H, W): free reshape.
    return out.reshape(n, cout, h, w)


def _reference_forward(x_nchw, conv_w, conv_b, weight_1):
    """Pure-JAX reference of the same math (for a sanity check)."""
    mu_i = jnp.mean(x_nchw, axis=(2, 3), keepdims=True)
    var_i = jnp.mean((x_nchw - mu_i) ** 2, axis=(2, 3), keepdims=True)
    x_in = (x_nchw - mu_i) / jnp.sqrt(var_i + _EPS_IN)

    mu_b = jnp.mean(x_in, axis=(0, 2, 3), keepdims=True)
    var_b = jnp.mean((x_in - mu_b) ** 2, axis=(0, 2, 3), keepdims=True)
    x_bn = (x_in - mu_b) / jnp.sqrt(var_b + _EPS_BN)

    x_act = jnp.maximum(x_bn, 0.0)
    y = jnp.einsum("nchw,oc->nohw", x_act, conv_w.reshape(conv_w.shape[0], -1))
    y = y + conv_b[None, :, None, None]
    return y * weight_1


if __name__ == "__main__":
    key = jax.random.PRNGKey(0)
    k_x, k_w, k_b = jax.random.split(key, 3)

    N, C, H, W = 2, 4, 16, 16
    C_OUT = 8

    x = jax.random.normal(k_x, (N, C, H, W), dtype=jnp.float32)

    # Deterministic parameter init (Conv2d(C, C_OUT, 1) shapes; synthetic values).
    conv_w = 0.1 * jax.random.normal(k_w, (C_OUT, C, 1, 1), dtype=jnp.float32)
    conv_b = 0.01 * jax.random.normal(k_b, (C_OUT,), dtype=jnp.float32)
    weight_1 = jnp.array([0.1], dtype=jnp.float32)

    out = channel_forward(x, conv_w, conv_b, weight_1)
    out = jax.block_until_ready(out)

    ref = _reference_forward(x, conv_w, conv_b, weight_1)
    assert out.shape == (N, C_OUT, H, W)
    assert jnp.allclose(out, ref, atol=1e-4, rtol=1e-4)

    print("KERNEL_OK")
</pallas_src>

<mosaic_0001>
module attributes {stable_mosaic.version = 11 : i64} {
  func.func @stats_kernel(%arg0: i32, %arg1: memref<2x4x256xf32, #tpu.memory_space<vmem>>, %arg2: memref<2x4x1xf32, #tpu.memory_space<vmem>>, %arg3: memref<2x4x1xf32, #tpu.memory_space<vmem>>, %arg4: memref<1x4x1xf32, #tpu.memory_space<vmem>>) attributes {dimension_semantics = [#tpu.dimension_semantics<arbitrary>], iteration_bounds = array<i64: 1>, scalar_prefetch = 0 : i64, scratch_operands = 0 : i64, tpu.core_type = #tpu.core_type<tc>, window_params = [{transform_indices = @transform_0, window_bounds = array<i64: 2, 4, 256>}, {transform_indices = @transform_1, window_bounds = array<i64: 2, 4, 1>}, {transform_indices = @transform_2, window_bounds = array<i64: 2, 4, 1>}, {pipeline_mode = #tpu.pipeline_mode<synchronous>, transform_indices = @transform_3, window_bounds = array<i64: 1, 4, 1>}]} {
    %c0 = arith.constant 0 : index
    %c0_0 = arith.constant 0 : index
    %c0_1 = arith.constant 0 : index
    %0 = vector.load %arg1[%c0, %c0_0, %c0_1] : memref<2x4x256xf32, #tpu.memory_space<vmem>>, vector<2x4x256xf32>
    %cst = arith.constant dense<0.000000e+00> : vector<2x4xf32>
    %1 = vector.multi_reduction <add>, %0, %cst [2] : vector<2x4x256xf32> to vector<2x4xf32>
    %2 = vector.shape_cast %1 : vector<2x4xf32> to vector<2x4x1xf32>
    %cst_2 = arith.constant 2.560000e+02 : f32
    %3 = vector.broadcast %cst_2 : f32 to vector<2x4x1xf32>
    %4 = arith.divf %2, %3 : vector<2x4x1xf32>
    %5 = vector.broadcast %4 : vector<2x4x1xf32> to vector<2x4x256xf32>
    %6 = arith.subf %0, %5 : vector<2x4x256xf32>
    %7 = arith.mulf %6, %6 : vector<2x4x256xf32>
    %cst_3 = arith.constant dense<0.000000e+00> : vector<2x4xf32>
    %8 = vector.multi_reduction <add>, %7, %cst_3 [2] : vector<2x4x256xf32> to vector<2x4xf32>
    %9 = vector.shape_cast %8 : vector<2x4xf32> to vector<2x4x1xf32>
    %cst_4 = arith.constant 2.560000e+02 : f32
    %10 = vector.broadcast %cst_4 : f32 to vector<2x4x1xf32>
    %11 = arith.divf %9, %10 : vector<2x4x1xf32>
    %c0_5 = arith.constant 0 : index
    %c0_6 = arith.constant 0 : index
    %c0_7 = arith.constant 0 : index
    %12 = vector.load %arg2[%c0_5, %c0_6, %c0_7] : memref<2x4x1xf32, #tpu.memory_space<vmem>>, vector<2x4x1xf32>
    tpu.vector_store %arg2[%c0_5, %c0_6, %c0_7], %4 {strides = array<i32>} : memref<2x4x1xf32, #tpu.memory_space<vmem>>, vector<2x4x1xf32>,
    %cst_8 = arith.constant 1.000000e-03 : f32
    %13 = vector.broadcast %cst_8 : f32 to vector<2x4x1xf32>
    %14 = arith.addf %11, %13 : vector<2x4x1xf32>
    %15 = math.rsqrt %14 : vector<2x4x1xf32>
    %c0_9 = arith.constant 0 : index
    %c0_10 = arith.constant 0 : index
    %c0_11 = arith.constant 0 : index
    %16 = vector.load %arg3[%c0_9, %c0_10, %c0_11] : memref<2x4x1xf32, #tpu.memory_space<vmem>>, vector<2x4x1xf32>
    tpu.vector_store %arg3[%c0_9, %c0_10, %c0_11], %15 {strides = array<i32>} : memref<2x4x1xf32, #tpu.memory_space<vmem>>, vector<2x4x1xf32>,
    %c0_i32 = arith.constant 0 : i32
    %17 = arith.cmpi eq, %arg0, %c0_i32 : i32
    %18 = arith.extui %17 : i1 to i32
    %c0_i32_12 = arith.constant 0 : i32
    %19 = arith.cmpi ne, %18, %c0_i32_12 : i32
    scf.if %19 {
      %cst_23 = arith.constant 0.000000e+00 : f32
      %31 = vector.broadcast %cst_23 : f32 to vector<1x4x1xf32>
      %c0_24 = arith.constant 0 : index
      %c0_25 = arith.constant 0 : index
      %c0_26 = arith.constant 0 : index
      %32 = vector.load %arg4[%c0_24, %c0_25, %c0_26] : memref<1x4x1xf32, #tpu.memory_space<vmem>>, vector<1x4x1xf32>
      tpu.vector_store %arg4[%c0_24, %c0_25, %c0_26], %31 {strides = array<i32>} : memref<1x4x1xf32, #tpu.memory_space<vmem>>, vector<1x4x1xf32>,
    } else {
    }
    %c0_13 = arith.constant 0 : index
    %c0_14 = arith.constant 0 : index
    %c0_15 = arith.constant 0 : index
    %20 = vector.load %arg4[%c0_13, %c0_14, %c0_15] : memref<1x4x1xf32, #tpu.memory_space<vmem>>, vector<1x4x1xf32>
    %cst_16 = arith.constant 1.000000e-03 : f32
    %21 = vector.broadcast %cst_16 : f32 to vector<2x4x1xf32>
    %22 = arith.addf %11, %21 : vector<2x4x1xf32>
    %23 = arith.divf %11, %22 : vector<2x4x1xf32>
    %cst_17 = arith.constant dense<0.000000e+00> : vector<4x1xf32>
    %24 = vector.multi_reduction <add>, %23, %cst_17 [0] : vector<2x4x1xf32> to vector<4x1xf32>
    %25 = vector.shape_cast %24 : vector<4x1xf32> to vector<1x4x1xf32>
    %26 = arith.addf %20, %25 : vector<1x4x1xf32>
    %c0_18 = arith.constant 0 : index
    %c0_19 = arith.constant 0 : index
    %c0_20 = arith.constant 0 : index
    %27 = vector.load %arg4[%c0_18, %c0_19, %c0_20] : memref<1x4x1xf32, #tpu.memory_space<vmem>>, vector<1x4x1xf32>
    tpu.vector_store %arg4[%c0_18, %c0_19, %c0_20], %26 {strides = array<i32>} : memref<1x4x1xf32, #tpu.memory_space<vmem>>, vector<1x4x1xf32>,
    %c0_i32_21 = arith.constant 0 : i32
    %28 = arith.cmpi eq, %arg0, %c0_i32_21 : i32
    %29 = arith.extui %28 : i1 to i32
    %c0_i32_22 = arith.constant 0 : i32
    %30 = arith.cmpi ne, %29, %c0_i32_22 : i32
    scf.if %30 {
      %c0_23 = arith.constant 0 : index
      %c0_24 = arith.constant 0 : index
      %c0_25 = arith.constant 0 : index
      %31 = vector.load %arg4[%c0_23, %c0_24, %c0_25] : memref<1x4x1xf32, #tpu.memory_space<vmem>>, vector<1x4x1xf32>
      %cst_26 = arith.constant 5.000000e-01 : f32
      %32 = vector.broadcast %cst_26 : f32 to vector<1x4x1xf32>
      %33 = arith.mulf %31, %32 : vector<1x4x1xf32>
      %cst_27 = arith.constant 9.99999974E-6 : f32
      %34 = vector.broadcast %cst_27 : f32 to vector<1x4x1xf32>
      %35 = arith.addf %33, %34 : vector<1x4x1xf32>
      %36 = math.rsqrt %35 : vector<1x4x1xf32>
      %c0_28 = arith.constant 0 : index
      %c0_29 = arith.constant 0 : index
      %c0_30 = arith.constant 0 : index
      %37 = vector.load %arg4[%c0_28, %c0_29, %c0_30] : memref<1x4x1xf32, #tpu.memory_space<vmem>>, vector<1x4x1xf32>
      tpu.vector_store %arg4[%c0_28, %c0_29, %c0_30], %36 {strides = array<i32>} : memref<1x4x1xf32, #tpu.memory_space<vmem>>, vector<1x4x1xf32>,
    } else {
    }
    return
  }
  func.func @transform_0(%arg0: i32) -> (i32, i32, i32) {
    %c0_i32 = arith.constant 0 : i32
    %c0_i32_0 = arith.constant 0 : i32
    %c0_i32_1 = arith.constant 0 : i32
    return %arg0, %c0_i32, %c0_i32_0 : i32, i32, i32
  }
  func.func @transform_1(%arg0: i32) -> (i32, i32, i32) {
    %c0_i32 = arith.constant 0 : i32
    %c0_i32_0 = arith.constant 0 : i32
    %c0_i32_1 = arith.constant 0 : i32
    return %arg0, %c0_i32, %c0_i32_0 : i32, i32, i32
  }
  func.func @transform_2(%arg0: i32) -> (i32, i32, i32) {
    %c0_i32 = arith.constant 0 : i32
    %c0_i32_0 = arith.constant 0 : i32
    %c0_i32_1 = arith.constant 0 : i32
    return %arg0, %c0_i32, %c0_i32_0 : i32, i32, i32
  }
  func.func @transform_3(%arg0: i32) -> (i32, i32, i32) {
    %c0_i32 = arith.constant 0 : i32
    %c0_i32_0 = arith.constant 0 : i32
    %c0_i32_1 = arith.constant 0 : i32
    %c0_i32_2 = arith.constant 0 : i32
    return %c0_i32, %c0_i32_0, %c0_i32_1 : i32, i32, i32
  }
}

</mosaic_0001>

<bundles_post_ra>
// kernel: tpu_custom_call.1
= control target key start
LH: loop header
LB: loop body
LE: loop exit
PB: predicated region body
PF: predicated region fallthrough
CT: control target
= control target key end

     0   :  { %9 = vsyncpa [#allocation3], 0  ;;  %s171_s12 = smov [#allocation2]   ;;  %s243_s0 = inlined_call_operand.hbm [shape: f32[2,4,256], index: 0, kind: input, shape index: {}]   ;;  %s244_s1 = inlined_call_operand.vmem [shape: f32[2,4,1], index: 1, kind: output, shape index: {0}]   ;;  %s245_s2 = inlined_call_operand.vmem [shape: f32[2,4,1], index: 2, kind: output, shape index: {1}]   ;;  %s246_s3 = inlined_call_operand.vmem [shape: f32[1,4,1], index: 3, kind: output, shape index: {2}]  }
   0x1   :  { %s15_s13 = sshll.u32 %s171_s12, 4  ;;  %s16_s13 = int_to_ptr.vmem [resolvable:$true] %s15_s13 }
   0x2   :  { %s157_s14 = scalar_lea.vmem %s16_s13, 256  ;;  %p162_p1 = scmp.lt.s32.totalorder %s16_s13, %s16_s13 }
   0x3   :  { %p158_p0 = scmp.ne.s32.totalorder %s16_s13, %s157_s14  ;;  %p163_p2 = scmp.lt.s32.totalorder %s157_s14, %s157_s14 }
   0x5   :  { %p164_p3 = por %p163_p2, %p162_p1 }
   0x7   :  { %p165_p4 = pnand %p164_p3, %p158_p0 }
   0x9   :  { %168 = shalt.err (!%p165_p4)
}
   0xa   :  { %s172_s15 = smov 128   ;;  %s173_s16 = smov 8  }
   0xb   :  { %21 = dma.hbm_to_vmem [thread:$0]  %s243_s0, 256, %s16_s13, [#allocation3], %s172_s15, %s172_s15, %s173_s16  }
   0xc   :  { %169 = dma.done.wait [#allocation3], 256  }
   0xd   :  { %170 = vsyncadd [#allocation3], 4294967040  ;;  %vm33_vm0 = vcmask 1043456   ;;  %v25_v0 = vld [vmem:[#allocation2] sm:$0xff]  ;;  %v26_v1 = vld [vmem:[#allocation2 + $0x8] sm:$0xff]  ;;  %v52_v12 = vlaneseq  ;;  %vm87_vm1 = vcmask 3072  }
   0xe   :  { %v29_v2 = vcombine.high %v25_v0, %v25_v0  ;;  %v34_v3 = vsel %vm33_vm0, %v25_v0, 0.0  ;;  %v30_v4 = vcombine.high %v26_v1, %v26_v1  ;;  %v39_v6 = vsel %vm33_vm0, %v26_v1, 0.0 }
   0xf   :  { %v174_v10 = vmov 839922192   ;;  %v53_v14 = vshrl.u32 %v52_v12, 7  ;;  %v175_v34 = vmov 0.0  }
  0x10   :  { %v35_v5 = vsel %vm33_vm0, %v29_v2, 0.0  ;;  %v40_v7 = vsel %vm33_vm0, %v30_v4, 0.0  ;;  %v50_v11 = vunpack.c.l.s4 %v174_v10  ;;  %100 = vst.msk [vmem:[%s246_s3] sm:$0xf] %vm87_vm1, %v175_v34 }
  0x11   :  { %v36_v8 = vadd.f32 %v35_v5, %v34_v3  ;;  %v41_v9 = vadd.f32 %v40_v7, %v39_v6 }
  0x12   :  { %v51_v13 = vunpack.c.0.s8 %v50_v11 }
  0x13   :  { %37 = vadd.xlane.f32.xlu0 %v36_v8 }
  0x14   :  { %v54_v15 = vsub.s32 %v51_v13, %v53_v14 }
  0x17   :  { %42 = vadd.xlane.f32.xlu0 %v41_v9  ;;  %v101_v48 = vld [vmem:[%s246_s3] sm:$0xf] }
  0x9c   :  { %v38_v16 = vpop.xlane.xlu0 %37 }
  0x9d   :  { %v45_v17 = vmul.f32 0.00390625, %v38_v16 }
  0x9f   :  { %v55_v18 = vrot.slane %v45_v17, %v54_v15  ;;  %88 = vst.msk [vmem:[%s244_s1] sm:$0xf] %vm87_vm1, %v45_v17 }
  0xa0   :  { %v43_v19 = vpop.xlane.xlu0 %42 }
  0xa1   :  { %v46_v20 = vmul.f32 0.00390625, %v43_v19  ;;  %v65_v21 = vsub.f32 %v25_v0, %v55_v18 }
  0xa3   :  { %v62_v22 = vrot.slane %v46_v20, %v54_v15  ;;  %89 = vst.msk [vmem:[%s244_s1 + $0x4] sm:$0xf] %vm87_vm1, %v46_v20  ;;  %v67_v23 = vmul.f32 %v65_v21, %v65_v21 }
  0xa5   :  { %v66_v24 = vsub.f32 %v26_v1, %v62_v22  ;;  %v71_v25 = vcombine.high %v67_v23, %v67_v23  ;;  %v75_v27 = vsel %vm33_vm0, %v67_v23, 0.0 }
  0xa7   :  { %v68_v26 = vmul.f32 %v66_v24, %v66_v24  ;;  %v76_v28 = vsel %vm33_vm0, %v71_v25, 0.0 }
  0xa8   :  { %v77_v29 = vadd.f32 %v76_v28, %v75_v27 }
  0xa9   :  { %v72_v30 = vcombine.high %v68_v26, %v68_v26  ;;  %v80_v31 = vsel %vm33_vm0, %v68_v26, 0.0 }
  0xaa   :  { %78 = vadd.xlane.f32.xlu1 %v77_v29 }
  0xab   :  { %v81_v32 = vsel %vm33_vm0, %v72_v30, 0.0 }
  0xac   :  { %v82_v33 = vadd.f32 %v81_v32, %v80_v31 }
  0xae   :  { %83 = vadd.xlane.f32.xlu1 %v82_v33 }
 0x133   :  { %v79_v35 = vpop.xlane.xlu1 %78 }
 0x134   :  { %v85_v36 = vmul.f32 0.00390625, %v79_v35 }
 0x136   :  { %v90_v37 = vadd.f32 0.001, %v85_v36 }
 0x137   :  { %v84_v38 = vpop.xlane.xlu1 %83 }
 0x138   :  { %139 = vrsqrt.f32 %v90_v37  ;;  %v86_v39 = vmul.f32 0.00390625, %v84_v38 }
 0x139   :  { %141 = vrcp.f32 %v90_v37 }
 0x13a   :  { %v91_v40 = vadd.f32 0.001, %v86_v39 }
 0x13c   :  { %143 = vrsqrt.f32 %v91_v40 }
 0x13d   :  { %145 = vrcp.f32 %v91_v40 }
 0x145   :  { %v140_v41 = vpop.eup %139 }
 0x146   :  { %v142_v42 = vpop.eup %141  ;;  %94 = vst.msk [vmem:[%s245_s2] sm:$0xf] %vm87_vm1, %v140_v41 }
 0x147   :  { %v103_v44 = vmul.f32 %v142_v42, %v85_v36 }
 0x149   :  { %v144_v43 = vpop.eup %143  ;;  %v106_v47 = vsel %vm33_vm0, %v103_v44, 0.0 }
 0x14a   :  { %v146_v45 = vpop.eup %145  ;;  %95 = vst.msk [vmem:[%s245_s2 + $0x4] sm:$0xf] %vm87_vm1, %v144_v43 }
 0x14b   :  { %v105_v46 = vmul.f32 %v146_v45, %v86_v39 }
 0x14d   :  { %v107_v49 = vsel %vm33_vm0, %v105_v46, 0.0 }
 0x14e   :  { %v108_v50 = vadd.f32 %v107_v49, %v106_v47 }
 0x150   :  { %v109_v51 = vadd.f32 %v108_v50, %v101_v48 }
 0x152   :  { %110 = vst.msk [vmem:[%s246_s3] sm:$0xf] %vm87_vm1, %v109_v51 }
 0x159   :  { %v114_v52 = vld [vmem:[%s246_s3] sm:$0xf] }
 0x15a   :  { %v115_v53 = vmul.f32 0.5, %v114_v52 }
 0x15c   :  { %v116_v54 = vadd.f32 1e-05, %v115_v53 }
 0x15e   :  { %147 = vrsqrt.f32 %v116_v54 }
 0x16b   :  { %v148_v55 = vpop.eup %147 }
 0x16c   :  { %118 = vst.msk [vmem:[%s246_s3] sm:$0xf] %vm87_vm1, %v148_v55 }
 0x16d   :  { %131 = vsyncpa [#allocation3], 1 }

</bundles_post_ra>
